<compile_context>
chip_gen: v6e
topology: v6e:2x2x1
jax: 0.10.0
libtpu: 0.0.40
codegen_flags: <defaults>
</compile_context>

<pallas_src>
import functools

import jax
import jax.numpy as jnp
from jax.experimental import pallas as pl
from jax.experimental.pallas import tpu as pltpu

LANE = 128
SUBLANE = 8


def _round_up(x, m):
    return (x + m - 1) // m * m


# --------------------------------------------------------------------------
# Kernels
# --------------------------------------------------------------------------
def _fused_kernel(x_ref, w3_ref, b3_ref, w12_ref, b12_ref, o_ref):
    # conv3-as-matmul + bias + ReLU (f32 accumulation on the MXU)
    y = jnp.dot(x_ref[...], w3_ref[...], preferred_element_type=jnp.float32)
    y = jnp.maximum(y + b3_ref[...], 0.0)
    # fused mlp1∘mlp2 (mlp1 has no activation, composed in prepare_params)
    o = jnp.dot(y.astype(w12_ref.dtype), w12_ref[...],
                preferred_element_type=jnp.float32) + b12_ref[...]
    o_ref[...] = jnp.maximum(o, 0.0).astype(o_ref.dtype)


def _unfused_kernel(x_ref, w3_ref, b3_ref, w1_ref, b1_ref, w2_ref, b2_ref, o_ref):
    # Used when folding mlp1∘mlp2 would increase FLOPs (F > 2*H).
    y = jnp.dot(x_ref[...], w3_ref[...], preferred_element_type=jnp.float32)
    y = jnp.maximum(y + b3_ref[...], 0.0)
    z = jnp.dot(y.astype(w1_ref.dtype), w1_ref[...],
                preferred_element_type=jnp.float32) + b1_ref[...]   # mlp1: no activation
    o = jnp.dot(z.astype(w2_ref.dtype), w2_ref[...],
                preferred_element_type=jnp.float32) + b2_ref[...]   # mlp2
    o_ref[...] = jnp.maximum(o, 0.0).astype(o_ref.dtype)


# --------------------------------------------------------------------------
# One-time parameter preprocessing (hoisted out of the per-call forward)
# --------------------------------------------------------------------------
def prepare_params(params, compute_dtype=jnp.float32):
    """Flatten conv3, (optionally) fold mlp1∘mlp2, pad to lane multiples, cast.

    compute_dtype only affects the (tiny, VMEM-resident) weights; biases stay
    f32 and the batch input x keeps the caller's dtype (no wrapper-side cast).
    """
    w3, b3, w1, b1, w2, b2 = params
    F = w3.shape[0]
    H = w1.shape[0]
    K = w3.shape[1] * w3.shape[2] * w3.shape[3]          # 64*4*4 = 1024
    Kp = _round_up(K, LANE)
    Fp = _round_up(F, LANE)

    w3_t = w3.reshape(F, -1).T                           # (K, F)
    w3_p = jnp.pad(w3_t, ((0, Kp - K), (0, Fp - F))).astype(compute_dtype)
    b3_p = jnp.pad(b3, (0, Fp - F)).reshape(1, Fp).astype(jnp.float32)

    # Fold only when it is not a FLOP regression: 2*F*F <= 2*F*H + 2*H*F.
    fused = F <= 2 * H
    if fused:
        w12 = w1.T @ w2.T                                # (F, F), exact (no act in mlp1)
        b12 = b1 @ w2.T + b2                             # (F,)
        w12_p = jnp.pad(w12, ((0, Fp - F), (0, 0))).astype(compute_dtype)  # (Fp, F)
        b12_p = b12.reshape(1, F).astype(jnp.float32)
        tensors = (w3_p, b3_p, w12_p, b12_p)
    else:
        Hp = _round_up(H, LANE)
        w1_p = jnp.pad(w1.T, ((0, Fp - F), (0, Hp - H))).astype(compute_dtype)  # (Fp, Hp)
        b1_p = jnp.pad(b1, (0, Hp - H)).reshape(1, Hp).astype(jnp.float32)
        w2_p = jnp.pad(w2.T, ((0, Hp - H), (0, 0))).astype(compute_dtype)       # (Hp, F)
        b2_p = b2.reshape(1, F).astype(jnp.float32)
        tensors = (w3_p, b3_p, w1_p, b1_p, w2_p, b2_p)

    tensors = tuple(jax.device_put(t) for t in tensors)
    return {"fused": fused, "tensors": tensors}


# --------------------------------------------------------------------------
# Forward
# --------------------------------------------------------------------------
@functools.partial(jax.jit, static_argnames=("fused", "tile_rows"))
def _forward_impl(x_nchw, tensors, *, fused, tile_rows):
    N = x_nchw.shape[0]
    x_flat = x_nchw.reshape(N, -1)                       # (N, K)
    K = x_flat.shape[1]
    Kp, Fp = tensors[0].shape                            # padded contraction / feature
    F = tensors[-1].shape[1]                             # true feature size

    # Pad only the contraction dim (a no-op for the canonical 64*4*4 = 1024).
    if Kp != K:
        x_flat = jnp.pad(x_flat, ((0, 0), (0, Kp - K)))
    # The batch dim is NOT padded: the partial last grid block is OOB-masked.

    # --- batch tile: as large as possible (amortize per-step overhead), but
    #     capped at ceil(N/2) so the "parallel" grid has >= 2 steps (v7x 2 TCs).
    tm = _round_up(min(int(tile_rows), N), SUBLANE)
    if N > SUBLANE:
        tm = min(tm, _round_up(-(-N // 2), SUBLANE))
    tm = max(tm, SUBLANE)
    grid_len = -(-N // tm)

    # Small tiles (small N) only: deepen x buffering to hide DMA-issue latency.
    if tm <= 512 and grid_len >= 2:
        x_spec = pl.BlockSpec((tm, Kp), lambda i: (i, 0),
                              pipeline_mode=pl.Buffered(3))
    else:
        x_spec = pl.BlockSpec((tm, Kp), lambda i: (i, 0))

    def resident(shape):
        # constant index_map -> weight/bias stays VMEM-resident across steps
        return pl.BlockSpec(shape, lambda i: (0, 0))

    kernel = _fused_kernel if fused else _unfused_kernel
    w_specs = [resident(t.shape) for t in tensors]

    out = pl.pallas_call(
        kernel,
        out_shape=jax.ShapeDtypeStruct((N, F), jnp.float32),
        grid_spec=pltpu.PrefetchScalarGridSpec(
            num_scalar_prefetch=0,
            grid=(grid_len,),
            in_specs=[x_spec] + w_specs,
            # Un-padded output: block last dim == full array dim (legal), so no
            # 4x-padded writes and no post-kernel slice copy.
            out_specs=pl.BlockSpec((tm, F), lambda i: (i, 0)),
        ),
        compiler_params=pltpu.CompilerParams(
            dimension_semantics=("parallel",),           # shard rows across TCs
            vmem_limit_bytes=32 * 1024 * 1024,           # v5e needs the override; OK on v7x
        ),
    )(x_flat, *tensors)
    return out


def tree_classifier_forward(x_nchw, prepped, *, tile_rows=2048):
    """x_nchw: (N, 64, 4, 4). Returns (N, feature_size) float32."""
    return _forward_impl(x_nchw, prepped["tensors"],
                         fused=prepped["fused"], tile_rows=tile_rows)


# --------------------------------------------------------------------------
# Reference + synthetic params
# --------------------------------------------------------------------------
def make_params(key, feature_size, hidden_size):
    """Deterministic synthetic parameters (PyTorch-like shapes)."""
    k = jax.random.split(key, 6)
    w3 = jax.random.normal(k[0], (feature_size, 64, 4, 4), jnp.float32) * 0.05
    b3 = jax.random.normal(k[1], (feature_size,), jnp.float32) * 0.05
    w1 = jax.random.normal(k[2], (hidden_size, feature_size), jnp.float32) * 0.05
    b1 = jax.random.normal(k[3], (hidden_size,), jnp.float32) * 0.05
    w2 = jax.random.normal(k[4], (feature_size, hidden_size), jnp.float32) * 0.05
    b2 = jax.random.normal(k[5], (feature_size,), jnp.float32) * 0.05
    return (w3, b3, w1, b1, w2, b2)


def reference_forward(x_nchw, params):
    """Pure-JAX reference matching the PyTorch semantics (un-fused)."""
    w3, b3, w1, b1, w2, b2 = params
    N = x_nchw.shape[0]
    F = w3.shape[0]
    y = x_nchw.reshape(N, -1) @ w3.reshape(F, -1).T + b3   # conv3 (4x4 valid on 4x4)
    y = jnp.maximum(y, 0.0)                                # ReLU
    z = y @ w1.T + b1                                      # mlp1 (no activation)
    o = z @ w2.T + b2                                      # mlp2
    return jnp.maximum(o, 0.0)                             # ReLU


# NOTE: conv2 / tanh / bn / bn1 / bn2 / dropout exist on the PyTorch module but
# are never used in forward(), so they are intentionally not implemented.

if __name__ == "__main__":
    key = jax.random.PRNGKey(0)
    kx, kp, kx2, kp2, kx3 = jax.random.split(key, 5)

    # ---- fused configuration (F <= 2H): feature=32, hidden=64 ----
    feature_size, hidden_size = 32, 64
    params = make_params(kp, feature_size, hidden_size)
    prepped = prepare_params(params)                       # one-time weight prep
    assert prepped["fused"]

    # Small batch (single grid step), f32 — tight check.
    x_small = jax.random.normal(kx, (8, 64, 4, 4), jnp.float32)
    out = jax.block_until_ready(tree_classifier_forward(x_small, prepped))
    ref = reference_forward(x_small, params)
    assert out.shape == (8, feature_size), out.shape
    assert jnp.allclose(out, ref, atol=1e-4, rtol=1e-4), "f32 small-batch mismatch"

    # Larger batch: multi-step parallel grid, partial (masked) last block, f32.
    x_big = jax.random.normal(kx2, (300, 64, 4, 4), jnp.float32)
    out_big = jax.block_until_ready(tree_classifier_forward(x_big, prepped))
    ref_big = reference_forward(x_big, params)
    assert out_big.shape == (300, feature_size), out_big.shape
    assert jnp.allclose(out_big, ref_big, atol=1e-4, rtol=1e-4), "f32 big-batch mismatch"

    # bf16 path: only when the caller's activations are ALREADY bf16 (no wrapper cast).
    x_big_bf16 = x_big.astype(jnp.bfloat16)
    prepped_bf16 = prepare_params(params, compute_dtype=jnp.bfloat16)
    out_bf16 = jax.block_until_ready(tree_classifier_forward(x_big_bf16, prepped_bf16))
    assert jnp.allclose(out_bf16, ref_big, atol=5e-2, rtol=5e-2), "bf16 mismatch"

    # ---- un-fused configuration (F > 2H): exercises the 3-matmul kernel ----
    params2 = make_params(kp2, 48, 16)
    prepped2 = prepare_params(params2)
    assert not prepped2["fused"]
    x2 = jax.random.normal(kx3, (8, 64, 4, 4), jnp.float32)
    out2 = jax.block_until_ready(tree_classifier_forward(x2, prepped2))
    ref2 = reference_forward(x2, params2)
    assert out2.shape == (8, 48), out2.shape
    assert jnp.allclose(out2, ref2, atol=1e-4, rtol=1e-4), "unfused mismatch"

    print("KERNEL_OK")
</pallas_src>

<mosaic_0001>
module attributes {stable_mosaic.version = 11 : i64} {
  func.func @_fused_kernel(%arg0: i32, %arg1: memref<8x1024xf32, #tpu.memory_space<vmem>>, %arg2: memref<1024x128xf32, #tpu.memory_space<vmem>>, %arg3: memref<1x128xf32, #tpu.memory_space<vmem>>, %arg4: memref<128x32xf32, #tpu.memory_space<vmem>>, %arg5: memref<1x32xf32, #tpu.memory_space<vmem>>, %arg6: memref<8x32xf32, #tpu.memory_space<vmem>>) attributes {dimension_semantics = [#tpu.dimension_semantics<parallel>], iteration_bounds = array<i64: 1>, scalar_prefetch = 0 : i64, scratch_operands = 0 : i64, tpu.core_type = #tpu.core_type<tc>, window_params = [{transform_indices = @transform_0, window_bounds = array<i64: 8, 1024>}, {pipeline_mode = #tpu.pipeline_mode<synchronous>, transform_indices = @transform_1, window_bounds = array<i64: 1024, 128>}, {pipeline_mode = #tpu.pipeline_mode<synchronous>, transform_indices = @transform_2, window_bounds = array<i64: 1, 128>}, {pipeline_mode = #tpu.pipeline_mode<synchronous>, transform_indices = @transform_3, window_bounds = array<i64: 128, 32>}, {pipeline_mode = #tpu.pipeline_mode<synchronous>, transform_indices = @transform_4, window_bounds = array<i64: 1, 32>}, {transform_indices = @transform_5, window_bounds = array<i64: 8, 32>}]} {
    %c0 = arith.constant 0 : index
    %c0_0 = arith.constant 0 : index
    %0 = vector.load %arg1[%c0, %c0_0] : memref<8x1024xf32, #tpu.memory_space<vmem>>, vector<8x1024xf32>
    %c0_1 = arith.constant 0 : index
    %c0_2 = arith.constant 0 : index
    %1 = vector.load %arg2[%c0_1, %c0_2] : memref<1024x128xf32, #tpu.memory_space<vmem>>, vector<1024x128xf32>
    %cst = arith.constant dense<0.000000e+00> : vector<8x128xf32>
    %2 = tpu.matmul %0, %1, %cst {dimension_numbers = #tpu.dot_dimension_numbers<[1], [0], [0], [1], [0, 0, 1, 1], [], []>} : vector<8x1024xf32>, vector<1024x128xf32>, vector<8x128xf32> -> vector<8x128xf32>
    %c0_3 = arith.constant 0 : index
    %c0_4 = arith.constant 0 : index
    %3 = vector.load %arg3[%c0_3, %c0_4] : memref<1x128xf32, #tpu.memory_space<vmem>>, vector<1x128xf32>
    %4 = vector.broadcast %3 : vector<1x128xf32> to vector<8x128xf32>
    %5 = arith.addf %2, %4 : vector<8x128xf32>
    %cst_5 = arith.constant 0.000000e+00 : f32
    %6 = vector.broadcast %cst_5 : f32 to vector<8x128xf32>
    %7 = arith.maximumf %5, %6 : vector<8x128xf32>
    %c0_6 = arith.constant 0 : index
    %c0_7 = arith.constant 0 : index
    %8 = vector.load %arg4[%c0_6, %c0_7] : memref<128x32xf32, #tpu.memory_space<vmem>>, vector<128x32xf32>
    %cst_8 = arith.constant dense<0.000000e+00> : vector<8x32xf32>
    %9 = tpu.matmul %7, %8, %cst_8 {dimension_numbers = #tpu.dot_dimension_numbers<[1], [0], [0], [1], [0, 0, 1, 1], [], []>} : vector<8x128xf32>, vector<128x32xf32>, vector<8x32xf32> -> vector<8x32xf32>
    %c0_9 = arith.constant 0 : index
    %c0_10 = arith.constant 0 : index
    %10 = vector.load %arg5[%c0_9, %c0_10] : memref<1x32xf32, #tpu.memory_space<vmem>>, vector<1x32xf32>
    %11 = vector.broadcast %10 : vector<1x32xf32> to vector<8x32xf32>
    %12 = arith.addf %9, %11 : vector<8x32xf32>
    %cst_11 = arith.constant 0.000000e+00 : f32
    %13 = vector.broadcast %cst_11 : f32 to vector<8x32xf32>
    %14 = arith.maximumf %12, %13 : vector<8x32xf32>
    %c0_12 = arith.constant 0 : index
    %c0_13 = arith.constant 0 : index
    %15 = vector.load %arg6[%c0_12, %c0_13] : memref<8x32xf32, #tpu.memory_space<vmem>>, vector<8x32xf32>
    tpu.vector_store %arg6[%c0_12, %c0_13], %14 {strides = array<i32>} : memref<8x32xf32, #tpu.memory_space<vmem>>, vector<8x32xf32>,
    return
  }
  func.func @transform_0(%arg0: i32) -> (i32, i32) {
    %c0_i32 = arith.constant 0 : i32
    %c0_i32_0 = arith.constant 0 : i32
    return %arg0, %c0_i32 : i32, i32
  }
  func.func @transform_1(%arg0: i32) -> (i32, i32) {
    %c0_i32 = arith.constant 0 : i32
    %c0_i32_0 = arith.constant 0 : i32
    %c0_i32_1 = arith.constant 0 : i32
    return %c0_i32, %c0_i32_0 : i32, i32
  }
  func.func @transform_2(%arg0: i32) -> (i32, i32) {
    %c0_i32 = arith.constant 0 : i32
    %c0_i32_0 = arith.constant 0 : i32
    %c0_i32_1 = arith.constant 0 : i32
    return %c0_i32, %c0_i32_0 : i32, i32
  }
  func.func @transform_3(%arg0: i32) -> (i32, i32) {
    %c0_i32 = arith.constant 0 : i32
    %c0_i32_0 = arith.constant 0 : i32
    %c0_i32_1 = arith.constant 0 : i32
    return %c0_i32, %c0_i32_0 : i32, i32
  }
  func.func @transform_4(%arg0: i32) -> (i32, i32) {
    %c0_i32 = arith.constant 0 : i32
    %c0_i32_0 = arith.constant 0 : i32
    %c0_i32_1 = arith.constant 0 : i32
    return %c0_i32, %c0_i32_0 : i32, i32
  }
  func.func @transform_5(%arg0: i32) -> (i32, i32) {
    %c0_i32 = arith.constant 0 : i32
    %c0_i32_0 = arith.constant 0 : i32
    return %arg0, %c0_i32 : i32, i32
  }
}

</mosaic_0001>

<bundles_post_ra>
// kernel: _forward_impl.1
= control target key start
LH: loop header
LB: loop body
LE: loop exit
PB: predicated region body
PF: predicated region fallthrough
CT: control target
= control target key end

     0   :  { %s1272_s0 = inlined_call_operand.vmem [shape: f32[8,1024], index: 0, kind: input, shape index: {}]   ;;  %s1273_s1 = inlined_call_operand.vmem [shape: f32[1024,128], index: 1, kind: input, shape index: {}]   ;;  %s1274_s2 = inlined_call_operand.vmem [shape: f32[1,128], index: 2, kind: input, shape index: {}]   ;;  %s1275_s3 = inlined_call_operand.vmem [shape: f32[128,32], index: 3, kind: input, shape index: {}]   ;;  %s1276_s4 = inlined_call_operand.vmem [shape: f32[1,32], index: 4, kind: input, shape index: {}]   ;;  %s1277_s5 = inlined_call_operand.hbm [shape: f32[8,32], index: 5, kind: output, shape index: {}]  }
   0x1   :  { %v60_v0 = vld [vmem:[%s1273_s1 + $0xf8] sm:$0xff]  ;;  %v59_v4 = vld [vmem:[%s1273_s1 + $0xf0] sm:$0xff]  ;;  %v58_v8 = vld [vmem:[%s1273_s1 + $0xe8] sm:$0xff] }
   0x2   :  { %v92_v1 = vld [vmem:[%s1273_s1 + $0x1f8] sm:$0xff]  ;;  %557 = vmatprep.subr.mxu0 %v60_v0  ;;  %v91_v5 = vld [vmem:[%s1273_s1 + $0x1f0] sm:$0xff]  ;;  %v90_v9 = vld [vmem:[%s1273_s1 + $0x1e8] sm:$0xff] }
   0x3   :  { %v44_v2 = vld [vmem:[%s1273_s1 + $0x78] sm:$0xff]  ;;  %592 = vmatprep.subr.mxu1 %v92_v1  ;;  %v43_v6 = vld [vmem:[%s1273_s1 + $0x70] sm:$0xff]  ;;  %v42_v10 = vld [vmem:[%s1273_s1 + $0x68] sm:$0xff] }
   0x4   :  { %v76_v3 = vld [vmem:[%s1273_s1 + $0x178] sm:$0xff]  ;;  %558 = vmatpush3.msra.mxu0 %v44_v2  ;;  %v75_v7 = vld [vmem:[%s1273_s1 + $0x170] sm:$0xff]  ;;  %v74_v11 = vld [vmem:[%s1273_s1 + $0x168] sm:$0xff] }
   0x5   :  { %593 = vmatpush3.msra.mxu1 %v76_v3  ;;  %559 = vmatprep.subr.mxu0 %v59_v4  ;;  %v57_v12 = vld [vmem:[%s1273_s1 + $0xe0] sm:$0xff]  ;;  %v56_v16 = vld [vmem:[%s1273_s1 + $0xd8] sm:$0xff]  ;;  %v55_v20 = vld [vmem:[%s1273_s1 + $0xd0] sm:$0xff] }
   0x6   :  { %594 = vmatprep.subr.mxu1 %v91_v5  ;;  %560 = vmatpush3.msra.mxu0 %v43_v6  ;;  %v89_v13 = vld [vmem:[%s1273_s1 + $0x1e0] sm:$0xff]  ;;  %v88_v17 = vld [vmem:[%s1273_s1 + $0x1d8] sm:$0xff]  ;;  %v87_v21 = vld [vmem:[%s1273_s1 + $0x1d0] sm:$0xff] }
   0x7   :  { %595 = vmatpush3.msra.mxu1 %v75_v7  ;;  %561 = vmatprep.subr.mxu0 %v58_v8  ;;  %v41_v14 = vld [vmem:[%s1273_s1 + $0x60] sm:$0xff]  ;;  %v40_v18 = vld [vmem:[%s1273_s1 + $0x58] sm:$0xff]  ;;  %v39_v22 = vld [vmem:[%s1273_s1 + $0x50] sm:$0xff] }
   0x8   :  { %596 = vmatprep.subr.mxu1 %v90_v9  ;;  %v73_v15 = vld [vmem:[%s1273_s1 + $0x160] sm:$0xff]  ;;  %562 = vmatpush3.msra.mxu0 %v42_v10  ;;  %v72_v19 = vld [vmem:[%s1273_s1 + $0x158] sm:$0xff]  ;;  %v71_v23 = vld [vmem:[%s1273_s1 + $0x150] sm:$0xff] }
   0x9   :  { %597 = vmatpush3.msra.mxu1 %v74_v11  ;;  %563 = vmatprep.subr.mxu0 %v57_v12  ;;  %v54_v24 = vld [vmem:[%s1273_s1 + $0xc8] sm:$0xff]  ;;  %v53_v28 = vld [vmem:[%s1273_s1 + $0xc0] sm:$0xff]  ;;  %v52_v32 = vld [vmem:[%s1273_s1 + $0xb8] sm:$0xff] }
   0xa   :  { %598 = vmatprep.subr.mxu1 %v89_v13  ;;  %564 = vmatpush3.msra.mxu0 %v41_v14  ;;  %v86_v25 = vld [vmem:[%s1273_s1 + $0x1c8] sm:$0xff]  ;;  %v85_v29 = vld [vmem:[%s1273_s1 + $0x1c0] sm:$0xff]  ;;  %v84_v33 = vld [vmem:[%s1273_s1 + $0x1b8] sm:$0xff] }
   0xb   :  { %599 = vmatpush3.msra.mxu1 %v73_v15  ;;  %565 = vmatprep.subr.mxu0 %v56_v16  ;;  %v38_v26 = vld [vmem:[%s1273_s1 + $0x48] sm:$0xff]  ;;  %v37_v30 = vld [vmem:[%s1273_s1 + $0x40] sm:$0xff]  ;;  %v36_v34 = vld [vmem:[%s1273_s1 + $0x38] sm:$0xff] }
   0xc   :  { %600 = vmatprep.subr.mxu1 %v88_v17  ;;  %566 = vmatpush3.msra.mxu0 %v40_v18  ;;  %v70_v27 = vld [vmem:[%s1273_s1 + $0x148] sm:$0xff]  ;;  %v69_v31 = vld [vmem:[%s1273_s1 + $0x140] sm:$0xff]  ;;  %v68_v35 = vld [vmem:[%s1273_s1 + $0x138] sm:$0xff] }
   0xd   :  { %601 = vmatpush3.msra.mxu1 %v72_v19  ;;  %567 = vmatprep.subr.mxu0 %v55_v20  ;;  %v51_v36 = vld [vmem:[%s1273_s1 + $0xb0] sm:$0xff]  ;;  %v50_v40 = vld [vmem:[%s1273_s1 + $0xa8] sm:$0xff]  ;;  %v49_v44 = vld [vmem:[%s1273_s1 + $0xa0] sm:$0xff] }
   0xe   :  { %602 = vmatprep.subr.mxu1 %v87_v21  ;;  %568 = vmatpush3.msra.mxu0 %v39_v22  ;;  %v83_v37 = vld [vmem:[%s1273_s1 + $0x1b0] sm:$0xff]  ;;  %v82_v41 = vld [vmem:[%s1273_s1 + $0x1a8] sm:$0xff]  ;;  %v81_v45 = vld [vmem:[%s1273_s1 + $0x1a0] sm:$0xff] }
   0xf   :  { %603 = vmatpush3.msra.mxu1 %v71_v23  ;;  %569 = vmatprep.subr.mxu0 %v54_v24  ;;  %v35_v38 = vld [vmem:[%s1273_s1 + $0x30] sm:$0xff]  ;;  %v34_v42 = vld [vmem:[%s1273_s1 + $0x28] sm:$0xff]  ;;  %v33_v46 = vld [vmem:[%s1273_s1 + $0x20] sm:$0xff] }
  0x10   :  { %604 = vmatprep.subr.mxu1 %v86_v25  ;;  %570 = vmatpush3.msra.mxu0 %v38_v26  ;;  %v67_v39 = vld [vmem:[%s1273_s1 + $0x130] sm:$0xff]  ;;  %v66_v43 = vld [vmem:[%s1273_s1 + $0x128] sm:$0xff]  ;;  %v65_v47 = vld [vmem:[%s1273_s1 + $0x120] sm:$0xff] }
  0x11   :  { %605 = vmatpush3.msra.mxu1 %v70_v27  ;;  %571 = vmatprep.subr.mxu0 %v53_v28  ;;  %v48_v48 = vld [vmem:[%s1273_s1 + $0x98] sm:$0xff]  ;;  %v47_v52 = vld [vmem:[%s1273_s1 + $0x90] sm:$0xff]  ;;  %v46_v56 = vld [vmem:[%s1273_s1 + $0x88] sm:$0xff] }
  0x12   :  { %606 = vmatprep.subr.mxu1 %v85_v29  ;;  %572 = vmatpush3.msra.mxu0 %v37_v30  ;;  %v80_v49 = vld [vmem:[%s1273_s1 + $0x198] sm:$0xff]  ;;  %v79_v53 = vld [vmem:[%s1273_s1 + $0x190] sm:$0xff]  ;;  %v78_v57 = vld [vmem:[%s1273_s1 + $0x188] sm:$0xff] }
  0x13   :  { %607 = vmatpush3.msra.mxu1 %v69_v31  ;;  %573 = vmatprep.subr.mxu0 %v52_v32  ;;  %v32_v50 = vld [vmem:[%s1273_s1 + $0x18] sm:$0xff]  ;;  %v31_v54 = vld [vmem:[%s1273_s1 + $0x10] sm:$0xff]  ;;  %v30_v58 = vld [vmem:[%s1273_s1 + $0x8] sm:$0xff] }
  0x14   :  { %608 = vmatprep.subr.mxu1 %v84_v33  ;;  %574 = vmatpush3.msra.mxu0 %v36_v34  ;;  %v64_v51 = vld [vmem:[%s1273_s1 + $0x118] sm:$0xff]  ;;  %v63_v55 = vld [vmem:[%s1273_s1 + $0x110] sm:$0xff]  ;;  %v62_v59 = vld [vmem:[%s1273_s1 + $0x108] sm:$0xff] }
  0x15   :  { %609 = vmatpush3.msra.mxu1 %v68_v35  ;;  %575 = vmatprep.subr.mxu0 %v51_v36  ;;  %v45_v60 = vld [vmem:[%s1273_s1 + $0x80] sm:$0xff]  ;;  %v22_v63 = vld [vmem:[%s1272_s0 + $0x8] sm:$0xff]  ;;  %v24_v2 = vld [vmem:[%s1272_s0 + $0x18] sm:$0xff] }
  0x16   :  { %610 = vmatprep.subr.mxu1 %v83_v37  ;;  %576 = vmatpush3.msra.mxu0 %v35_v38  ;;  %v77_v61 = vld [vmem:[%s1273_s1 + $0x180] sm:$0xff]  ;;  %v124_v3 = vld [vmem:[%s1273_s1 + $0x2f8] sm:$0xff]  ;;  %v23_v5 = vld [vmem:[%s1272_s0 + $0x10] sm:$0xff] }
  0x17   :  { %611 = vmatpush3.msra.mxu1 %v67_v39  ;;  %577 = vmatprep.subr.mxu0 %v50_v40  ;;  %v29_v62 = vld [vmem:[%s1273_s1] sm:$0xff]  ;;  %v156_v4 = vld [vmem:[%s1273_s1 + $0x3f8] sm:$0xff]  ;;  %v123_v8 = vld [vmem:[%s1273_s1 + $0x2f0] sm:$0xff] }
  0x18   :  { %612 = vmatprep.subr.mxu1 %v82_v41  ;;  %578 = vmatpush3.msra.mxu0 %v34_v42  ;;  %v61_v0 = vld [vmem:[%s1273_s1 + $0x100] sm:$0xff]  ;;  %v108_v6 = vld [vmem:[%s1273_s1 + $0x278] sm:$0xff]  ;;  %v155_v9 = vld [vmem:[%s1273_s1 + $0x3f0] sm:$0xff] }
  0x19   :  { %613 = vmatpush3.msra.mxu1 %v66_v43  ;;  %579 = vmatprep.subr.mxu0 %v49_v44  ;;  %v21_v1 = vld [vmem:[%s1272_s0] sm:$0xff]  ;;  %v140_v7 = vld [vmem:[%s1273_s1 + $0x378] sm:$0xff]  ;;  %v107_v10 = vld [vmem:[%s1273_s1 + $0x270] sm:$0xff] }
  0x1a   :  { %614 = vmatprep.subr.mxu1 %v81_v45  ;;  %580 = vmatpush3.msra.mxu0 %v33_v46  ;;  %v139_v11 = vld [vmem:[%s1273_s1 + $0x370] sm:$0xff]  ;;  %v122_v12 = vld [vmem:[%s1273_s1 + $0x2e8] sm:$0xff]  ;;  %v121_v16 = vld [vmem:[%s1273_s1 + $0x2e0] sm:$0xff] }
  0x1b   :  { %615 = vmatpush3.msra.mxu1 %v65_v47  ;;  %581 = vmatprep.subr.mxu0 %v48_v48  ;;  %v154_v13 = vld [vmem:[%s1273_s1 + $0x3e8] sm:$0xff]  ;;  %v153_v17 = vld [vmem:[%s1273_s1 + $0x3e0] sm:$0xff]  ;;  %v120_v20 = vld [vmem:[%s1273_s1 + $0x2d8] sm:$0xff] }
  0x1c   :  { %616 = vmatprep.subr.mxu1 %v80_v49  ;;  %582 = vmatpush3.msra.mxu0 %v32_v50  ;;  %v106_v14 = vld [vmem:[%s1273_s1 + $0x268] sm:$0xff]  ;;  %v105_v18 = vld [vmem:[%s1273_s1 + $0x260] sm:$0xff]  ;;  %v152_v21 = vld [vmem:[%s1273_s1 + $0x3d8] sm:$0xff] }
  0x1d   :  { %617 = vmatpush3.msra.mxu1 %v64_v51  ;;  %583 = vmatprep.subr.mxu0 %v47_v52  ;;  %v138_v15 = vld [vmem:[%s1273_s1 + $0x368] sm:$0xff]  ;;  %v137_v19 = vld [vmem:[%s1273_s1 + $0x360] sm:$0xff]  ;;  %v104_v22 = vld [vmem:[%s1273_s1 + $0x258] sm:$0xff] }
  0x1e   :  { %618 = vmatprep.subr.mxu1 %v79_v53  ;;  %584 = vmatpush3.msra.mxu0 %v31_v54  ;;  %v136_v23 = vld [vmem:[%s1273_s1 + $0x358] sm:$0xff]  ;;  %v119_v24 = vld [vmem:[%s1273_s1 + $0x2d0] sm:$0xff]  ;;  %v118_v28 = vld [vmem:[%s1273_s1 + $0x2c8] sm:$0xff] }
  0x1f   :  { %619 = vmatpush3.msra.mxu1 %v63_v55  ;;  %585 = vmatprep.subr.mxu0 %v46_v56  ;;  %v151_v25 = vld [vmem:[%s1273_s1 + $0x3d0] sm:$0xff]  ;;  %v150_v29 = vld [vmem:[%s1273_s1 + $0x3c8] sm:$0xff] }
  0x20   :  { %620 = vmatprep.subr.mxu1 %v78_v57  ;;  %586 = vmatpush3.msra.mxu0 %v30_v58  ;;  %v103_v26 = vld [vmem:[%s1273_s1 + $0x250] sm:$0xff]  ;;  %v102_v30 = vld [vmem:[%s1273_s1 + $0x248] sm:$0xff] }
  0x21   :  { %621 = vmatpush3.msra.mxu1 %v62_v59  ;;  %587 = vmatprep.subr.mxu0 %v45_v60  ;;  %v135_v27 = vld [vmem:[%s1273_s1 + $0x350] sm:$0xff]  ;;  %v134_v31 = vld [vmem:[%s1273_s1 + $0x348] sm:$0xff] }
  0x22   :  { %622 = vmatprep.subr.mxu1 %v77_v61  ;;  %588 = vmatpush3.msra.mxu0 %v29_v62 }
  0x23   :  { %228 = vmatprep.mubr.f32.mxu0 %v22_v63  ;;  %623 = vmatpush3.msra.mxu1 %v61_v0 }
  0x24   :  { %229 = vmatmul.mubr.f32.vlgmr.msra.gmra.mxu0 %v21_v1  ;;  %298 = vmatprep.mubr.f32.mxu1 %v24_v2 }
  0x25   :  { %627 = vmatprep.subr.mxu0 %v124_v3  ;;  %662 = vmatprep.subr.mxu1 %v156_v4 }
  0x26   :  { %299 = vmatmul.mubr.f32.vlgmr.msra.gmra.mxu1 %v23_v5  ;;  %628 = vmatpush3.msra.mxu0 %v108_v6 }
  0x27   :  { %663 = vmatpush3.msra.mxu1 %v140_v7  ;;  %629 = vmatprep.subr.mxu0 %v123_v8 }
  0x28   :  { %664 = vmatprep.subr.mxu1 %v155_v9  ;;  %630 = vmatpush3.msra.mxu0 %v107_v10 }
  0x29   :  { %665 = vmatpush3.msra.mxu1 %v139_v11  ;;  %631 = vmatprep.subr.mxu0 %v122_v12 }
  0x2a   :  { %666 = vmatprep.subr.mxu1 %v154_v13  ;;  %632 = vmatpush3.msra.mxu0 %v106_v14 }
  0x2b   :  { %667 = vmatpush3.msra.mxu1 %v138_v15  ;;  %633 = vmatprep.subr.mxu0 %v121_v16 }
  0x2c   :  { %668 = vmatprep.subr.mxu1 %v153_v17  ;;  %634 = vmatpush3.msra.mxu0 %v105_v18 }
  0x2d   :  { %669 = vmatpush3.msra.mxu1 %v137_v19  ;;  %635 = vmatprep.subr.mxu0 %v120_v20 }
  0x2e   :  { %670 = vmatprep.subr.mxu1 %v152_v21  ;;  %636 = vmatpush3.msra.mxu0 %v104_v22 }
  0x2f   :  { %671 = vmatpush3.msra.mxu1 %v136_v23  ;;  %637 = vmatprep.subr.mxu0 %v119_v24 }
  0x30   :  { %672 = vmatprep.subr.mxu1 %v151_v25 }
  0x31   :  { %10 = vsyncpa [#allocation3], 0  ;;  %638 = vmatpush3.msra.mxu0 %v103_v26  ;;  %673 = vmatpush3.msra.mxu1 %v135_v27  ;;  %v117_v32 = vld [vmem:[%s1273_s1 + $0x2c0] sm:$0xff]  ;;  %v116_v36 = vld [vmem:[%s1273_s1 + $0x2b8] sm:$0xff]  ;;  %v774_v9 = vmov 0.0   ;;  %vm775_vm0 = vmmov 0  }
  0x32   :  { %v149_v33 = vld [vmem:[%s1273_s1 + $0x3c0] sm:$0xff]  ;;  %639 = vmatprep.subr.mxu0 %v118_v28  ;;  %674 = vmatprep.subr.mxu1 %v150_v29  ;;  %v148_v37 = vld [vmem:[%s1273_s1 + $0x3b8] sm:$0xff]  ;;  %v115_v40 = vld [vmem:[%s1273_s1 + $0x2b0] sm:$0xff]  ;;  %vm539_vm1 = vcmask 261120  }
  0x33   :  { %v101_v34 = vld [vmem:[%s1273_s1 + $0x240] sm:$0xff]  ;;  %640 = vmatpush3.msra.mxu0 %v102_v30  ;;  %675 = vmatpush3.msra.mxu1 %v134_v31  ;;  %v100_v38 = vld [vmem:[%s1273_s1 + $0x238] sm:$0xff]  ;;  %v147_v41 = vld [vmem:[%s1273_s1 + $0x3b0] sm:$0xff] }
  0x34   :  { %v133_v35 = vld [vmem:[%s1273_s1 + $0x340] sm:$0xff]  ;;  %641 = vmatprep.subr.mxu0 %v117_v32  ;;  %676 = vmatprep.subr.mxu1 %v149_v33  ;;  %v132_v39 = vld [vmem:[%s1273_s1 + $0x338] sm:$0xff]  ;;  %v99_v42 = vld [vmem:[%s1273_s1 + $0x230] sm:$0xff] }
  0x35   :  { %642 = vmatpush3.msra.mxu0 %v101_v34  ;;  %677 = vmatpush3.msra.mxu1 %v133_v35  ;;  %v131_v43 = vld [vmem:[%s1273_s1 + $0x330] sm:$0xff]  ;;  %v114_v44 = vld [vmem:[%s1273_s1 + $0x2a8] sm:$0xff]  ;;  %v113_v48 = vld [vmem:[%s1273_s1 + $0x2a0] sm:$0xff] }
  0x36   :  { %643 = vmatprep.subr.mxu0 %v116_v36  ;;  %678 = vmatprep.subr.mxu1 %v148_v37  ;;  %v146_v45 = vld [vmem:[%s1273_s1 + $0x3a8] sm:$0xff]  ;;  %v145_v49 = vld [vmem:[%s1273_s1 + $0x3a0] sm:$0xff]  ;;  %v112_v52 = vld [vmem:[%s1273_s1 + $0x298] sm:$0xff] }
  0x37   :  { %644 = vmatpush3.msra.mxu0 %v100_v38  ;;  %679 = vmatpush3.msra.mxu1 %v132_v39  ;;  %v98_v46 = vld [vmem:[%s1273_s1 + $0x228] sm:$0xff]  ;;  %v97_v50 = vld [vmem:[%s1273_s1 + $0x220] sm:$0xff]  ;;  %v144_v53 = vld [vmem:[%s1273_s1 + $0x398] sm:$0xff] }
  0x38   :  { %645 = vmatprep.subr.mxu0 %v115_v40  ;;  %680 = vmatprep.subr.mxu1 %v147_v41  ;;  %v130_v47 = vld [vmem:[%s1273_s1 + $0x328] sm:$0xff]  ;;  %v129_v51 = vld [vmem:[%s1273_s1 + $0x320] sm:$0xff]  ;;  %v96_v54 = vld [vmem:[%s1273_s1 + $0x218] sm:$0xff] }
  0x39   :  { %646 = vmatpush3.msra.mxu0 %v99_v42  ;;  %681 = vmatpush3.msra.mxu1 %v131_v43  ;;  %v128_v55 = vld [vmem:[%s1273_s1 + $0x318] sm:$0xff]  ;;  %v111_v56 = vld [vmem:[%s1273_s1 + $0x290] sm:$0xff]  ;;  %v110_v60 = vld [vmem:[%s1273_s1 + $0x288] sm:$0xff] }
  0x3a   :  { %647 = vmatprep.subr.mxu0 %v114_v44  ;;  %682 = vmatprep.subr.mxu1 %v146_v45  ;;  %v143_v57 = vld [vmem:[%s1273_s1 + $0x390] sm:$0xff]  ;;  %v142_v61 = vld [vmem:[%s1273_s1 + $0x388] sm:$0xff]  ;;  %v109_v0 = vld [vmem:[%s1273_s1 + $0x280] sm:$0xff] }
  0x3b   :  { %648 = vmatpush3.msra.mxu0 %v98_v46  ;;  %683 = vmatpush3.msra.mxu1 %v130_v47  ;;  %v95_v58 = vld [vmem:[%s1273_s1 + $0x210] sm:$0xff]  ;;  %v94_v62 = vld [vmem:[%s1273_s1 + $0x208] sm:$0xff]  ;;  %v141_v1 = vld [vmem:[%s1273_s1 + $0x380] sm:$0xff] }
  0x3c   :  { %649 = vmatprep.subr.mxu0 %v113_v48  ;;  %684 = vmatprep.subr.mxu1 %v145_v49  ;;  %v127_v59 = vld [vmem:[%s1273_s1 + $0x310] sm:$0xff]  ;;  %v126_v63 = vld [vmem:[%s1273_s1 + $0x308] sm:$0xff]  ;;  %v93_v2 = vld [vmem:[%s1273_s1 + $0x200] sm:$0xff] }
  0x3d   :  { %650 = vmatpush3.msra.mxu0 %v97_v50  ;;  %685 = vmatpush3.msra.mxu1 %v129_v51  ;;  %v26_v3 = vld [vmem:[%s1272_s0 + $0x28] sm:$0xff]  ;;  %v125_v4 = vld [vmem:[%s1273_s1 + $0x300] sm:$0xff]  ;;  %v28_v5 = vld [vmem:[%s1272_s0 + $0x38] sm:$0xff] }
  0x3e   :  { %651 = vmatprep.subr.mxu0 %v112_v52  ;;  %686 = vmatprep.subr.mxu1 %v144_v53  ;;  %v25_v6 = vld [vmem:[%s1272_s0 + $0x20] sm:$0xff]  ;;  %v27_v7 = vld [vmem:[%s1272_s0 + $0x30] sm:$0xff]  ;;  %v460_v8 = vld [vmem:[%s1275_s3 + $0x78] sm:$0xff] }
  0x3f   :  { %652 = vmatpush3.msra.mxu0 %v96_v54  ;;  %687 = vmatpush3.msra.mxu1 %v128_v55  ;;  %v459_v10 = vld [vmem:[%s1275_s3 + $0x70] sm:$0xff]  ;;  %v458_v11 = vld [vmem:[%s1275_s3 + $0x68] sm:$0xff]  ;;  %v457_v12 = vld [vmem:[%s1275_s3 + $0x60] sm:$0xff] }
  0x40   :  { %653 = vmatprep.subr.mxu0 %v111_v56  ;;  %688 = vmatprep.subr.mxu1 %v143_v57  ;;  %v456_v13 = vld [vmem:[%s1275_s3 + $0x58] sm:$0xff]  ;;  %v455_v14 = vld [vmem:[%s1275_s3 + $0x50] sm:$0xff]  ;;  %v454_v15 = vld [vmem:[%s1275_s3 + $0x48] sm:$0xff] }
  0x41   :  { %654 = vmatpush3.msra.mxu0 %v95_v58  ;;  %689 = vmatpush3.msra.mxu1 %v127_v59  ;;  %v453_v16 = vld [vmem:[%s1275_s3 + $0x40] sm:$0xff]  ;;  %v452_v17 = vld [vmem:[%s1275_s3 + $0x38] sm:$0xff]  ;;  %v451_v18 = vld [vmem:[%s1275_s3 + $0x30] sm:$0xff] }
  0x42   :  { %655 = vmatprep.subr.mxu0 %v110_v60  ;;  %690 = vmatprep.subr.mxu1 %v142_v61  ;;  %v450_v19 = vld [vmem:[%s1275_s3 + $0x28] sm:$0xff]  ;;  %v449_v20 = vld [vmem:[%s1275_s3 + $0x20] sm:$0xff]  ;;  %v448_v21 = vld [vmem:[%s1275_s3 + $0x18] sm:$0xff] }
  0x43   :  { %656 = vmatpush3.msra.mxu0 %v94_v62  ;;  %691 = vmatpush3.msra.mxu1 %v126_v63  ;;  %v447_v22 = vld [vmem:[%s1275_s3 + $0x10] sm:$0xff]  ;;  %v446_v23 = vld [vmem:[%s1275_s3 + $0x8] sm:$0xff]  ;;  %v445_v24 = vld [vmem:[%s1275_s3] sm:$0xff] }
  0x44   :  { %657 = vmatprep.subr.mxu0 %v109_v0  ;;  %692 = vmatprep.subr.mxu1 %v141_v1  ;;  %v555_v29 = vld [vmem:[%s1274_s2] ss:$0 sm:$0xff]  ;;  %s776_s2 = smov [#allocation2]  }
  0x45   :  { %658 = vmatpush3.msra.mxu0 %v93_v2  ;;  %368 = vmatprep.mubr.f32.mxu0 %v26_v3  ;;  %v556_v43 = vld [vmem:[%s1276_s4] ss:$0 sm:$0xff]  ;;  %s547_s21 = sshll.u32 %s776_s2, 4  ;;  %s548_s21 = int_to_ptr.vmem [resolvable:$true] %s547_s21 }
  0x46   :  { %693 = vmatpush3.msra.mxu1 %v125_v4  ;;  %438 = vmatprep.mubr.f32.mxu1 %v28_v5  ;;  %s752_s22 = scalar_lea.vmem %s548_s21, 128  ;;  %p757_p1 = scmp.lt.s32.totalorder %s548_s21, %s548_s21 }
  0x47   :  { %369 = vmatmul.mubr.f32.vlgmr.msra.gmra.mxu0 %v25_v6  ;;  %439 = vmatmul.mubr.f32.vlgmr.msra.gmra.mxu1 %v27_v7  ;;  %p753_p0 = scmp.ne.s32.totalorder %s548_s21, %s752_s22  ;;  %p758_p2 = scmp.lt.s32.totalorder %s752_s22, %s752_s22 }
  0x48   :  { %714 = vmatprep.subr.mxu0 %v774_v9  ;;  %746 = vmatprep.mubr.msk.f32.mxu0 %vm775_vm0, %v774_v9 }
  0x49   :  { %715 = vmatpush3.msra.mxu0 %v460_v8  ;;  %p759_p3 = por %p758_p2, %p757_p1 }
  0x4a   :  { %716 = vmatprep.subr.mxu0 %v774_v9 }
  0x4b   :  { %717 = vmatpush3.msra.mxu0 %v459_v10  ;;  %p760_p4 = pnand %p759_p3, %p753_p0 }
  0x4c   :  { %718 = vmatprep.subr.mxu0 %v774_v9 }
  0x4d   :  { %719 = vmatpush3.msra.mxu0 %v458_v11 }
  0x4e   :  { %720 = vmatprep.subr.mxu0 %v774_v9 }
  0x4f   :  { %721 = vmatpush3.msra.mxu0 %v457_v12 }
  0x50   :  { %722 = vmatprep.subr.mxu0 %v774_v9 }
  0x51   :  { %723 = vmatpush3.msra.mxu0 %v456_v13 }
  0x52   :  { %724 = vmatprep.subr.mxu0 %v774_v9 }
  0x53   :  { %725 = vmatpush3.msra.mxu0 %v455_v14 }
  0x54   :  { %726 = vmatprep.subr.mxu0 %v774_v9 }
  0x55   :  { %727 = vmatpush3.msra.mxu0 %v454_v15 }
  0x56   :  { %728 = vmatprep.subr.mxu0 %v774_v9 }
  0x57   :  { %729 = vmatpush3.msra.mxu0 %v453_v16 }
  0x58   :  { %730 = vmatprep.subr.mxu0 %v774_v9 }
  0x59   :  { %731 = vmatpush3.msra.mxu0 %v452_v17 }
  0x5a   :  { %732 = vmatprep.subr.mxu0 %v774_v9 }
  0x5b   :  { %733 = vmatpush3.msra.mxu0 %v451_v18 }
  0x5c   :  { %734 = vmatprep.subr.mxu0 %v774_v9 }
  0x5d   :  { %735 = vmatpush3.msra.mxu0 %v450_v19 }
  0x5e   :  { %736 = vmatprep.subr.mxu0 %v774_v9 }
  0x5f   :  { %737 = vmatpush3.msra.mxu0 %v449_v20 }
  0x60   :  { %738 = vmatprep.subr.mxu0 %v774_v9 }
  0x61   :  { %739 = vmatpush3.msra.mxu0 %v448_v21 }
  0x62   :  { %740 = vmatprep.subr.mxu0 %v774_v9 }
  0x63   :  { %741 = vmatpush3.msra.mxu0 %v447_v22 }
  0x64   :  { %742 = vmatprep.subr.mxu0 %v774_v9 }
  0x65   :  { %743 = vmatpush3.msra.mxu0 %v446_v23 }
  0x66   :  { %744 = vmatprep.subr.mxu0 %v774_v9 }
  0x67   :  { %745 = vmatpush3.msra.mxu0 %v445_v24 }
  0xe4   :  { %v589_v25 = vpop.f32.mrf.mxu0 }
  0xe6   :  { %v624_v26 = vpop.f32.mrf.mxu1  ;;  %v590_v27 = vpop.f32.mrf.mxu0 }
  0xe7   :  { %v591_v28 = vadd.f32 %v590_v27, %v589_v25 }
  0xe8   :  { %v625_v30 = vpop.f32.mrf.mxu1 }
  0xe9   :  { %v231_v31 = vadd.f32 %v591_v28, %v555_v29  ;;  %v626_v32 = vadd.f32 %v625_v30, %v624_v26 }
  0xeb   :  { %v301_v37 = vadd.f32 %v626_v32, %v231_v31 }
 0x107   :  { %v659_v33 = vpop.f32.mrf.mxu0  ;;  %v694_v34 = vpop.f32.mrf.mxu1 }
 0x109   :  { %v660_v35 = vpop.f32.mrf.mxu0  ;;  %v695_v36 = vpop.f32.mrf.mxu1 }
 0x10a   :  { %v661_v38 = vadd.f32 %v660_v35, %v659_v33  ;;  %v696_v40 = vadd.f32 %v695_v36, %v694_v34 }
 0x10c   :  { %v371_v39 = vadd.f32 %v661_v38, %v301_v37 }
 0x10e   :  { %v441_v41 = vadd.f32 %v696_v40, %v371_v39 }
 0x110   :  { %v444_v42 = vmax.f32 %v441_v41, 0.0 }
 0x112   :  { %747 = vmatmul.mubr.f32.vlgmr.msra.gmra.mxu0 %v444_v42 }
 0x1d2   :  { %v534_v44 = vpop.f32.mrf.mxu0 }
 0x1d3   :  { %v535_v45 = vadd.f32 %v556_v43, %v534_v44 }
 0x1d4   :  { %v748_v46 = vpop.f32.mrf.mxu0 }
 0x1d5   :  { %v538_v47 = vmax.f32 %v535_v45, 0.0 }
 0x1d7   :  { %540 = vst.msk [vmem:[#allocation2] sm:$0xff] %vm539_vm1, %v538_v47 }
 0x1d8   :  { %763 = shalt.err (!%p760_p4)
}
 0x1d9   :  { %550 = dma.vmem_to_hbm [thread:$0]  %s548_s21, 128, %s1277_s5, [#allocation3]  }
 0x1da   :  { %772 = dma.done.wait [#allocation3], 128  }
 0x1db   :  { %773 = vsyncadd [#allocation3], 4294967168 }
 0x1dc   :  { %554 = vsyncpa [#allocation3], 1 }

</bundles_post_ra>
